<compile_context>
chip_gen: v7x
topology: tpu7x:2x2x1
jax: 0.10.0
libtpu: 0.0.40
codegen_flags: <defaults>
</compile_context>

<pallas_src>
import jax
import jax.numpy as jnp
from jax.experimental import pallas as pl
from jax.experimental.pallas import tpu as pltpu


def _connect_kernel(a_ref, b_ref, w_ref, bias_ref, o_ref):
    # a_ref:    (B, F, Na)     vectors_a with the trailing W=1 dim squeezed
    # b_ref:    (B, F, Nb)     vectors_b, ditto
    # w_ref:    (C, 2F)        PyTorch Linear weight (first F cols act on vectors_b)
    # bias_ref: (C, 1)
    # o_ref:    (B, C, Na*Nb)  lane-dense output
    B, F, Na = a_ref.shape
    Nb = b_ref.shape[2]
    K = Na * Nb

    wb = w_ref[:, 0:F]            # (C, F) acts on vectors_b (first half of cat)
    wa = w_ref[:, F:2 * F]        # (C, F) acts on vectors_a (second half of cat)
    bias = bias_ref[...]          # (C, 1)

    # Selector ("expansion") matrices, built in-kernel from iota compares so the
    # flattened logits are born lane-dense — no reshape/relayout, no extra HBM
    # operands, no DMA. Hoisted out of the batch loop.
    #   Ra[j, k] = 1  iff  k // Nb == j   ->  sa @ Ra repeats sa[:, j] Nb times
    #   Rb[i, k] = 1  iff  k %  Nb == i   ->  sb @ Rb tiles sb Na times
    ja = jax.lax.broadcasted_iota(jnp.int32, (Na, K), 0)
    ka = jax.lax.broadcasted_iota(jnp.int32, (Na, K), 1)
    d = ka - ja * Nb                                   # k - j*Nb
    ra = ((d >= 0) & (d < Nb)).astype(jnp.float32)     # div-free "k // Nb == j"

    ib = jax.lax.broadcasted_iota(jnp.int32, (Nb, K), 0)
    kb = jax.lax.broadcasted_iota(jnp.int32, (Nb, K), 1)
    if Nb & (Nb - 1) == 0:
        kmod = kb & (Nb - 1)                           # k % Nb via mask (pow2 Nb)
    else:
        kmod = kb % Nb
    rb = (kmod == ib).astype(jnp.float32)              # "k % Nb == i"

    for n in range(B):   # B is tiny (2); statically unrolled at trace time
        sb = jnp.dot(wb, b_ref[n], preferred_element_type=jnp.float32)          # (C, Nb)
        sa = jnp.dot(wa, a_ref[n], preferred_element_type=jnp.float32) + bias   # (C, Na)
        # logits[c, j*Nb + i] = sa[c, j] + sb[c, i] + bias[c]  (256 dense lanes)
        logits = (jnp.dot(sa, ra, preferred_element_type=jnp.float32)
                  + jnp.dot(sb, rb, preferred_element_type=jnp.float32))        # (C, K)
        # sigmoid(x) = 0.5 * tanh(0.5 x) + 0.5 : single EUP push, no overflow.
        o_ref[n] = (0.5 * jnp.tanh(0.5 * logits) + 0.5).astype(o_ref.dtype)


def connect_net_v3_forward(vectors_a, vectors_b, weight, bias):
    """vectors_a: (B, F, Na, 1), vectors_b: (B, F, Nb, 1)
    weight: (C, 2F) PyTorch Linear layout, bias: (C,)
    returns (B, C, Na, Nb)"""
    B, F, Na, _ = vectors_a.shape
    _, _, Nb, _ = vectors_b.shape
    C = weight.shape[0]
    K = Na * Nb

    bias2d = bias.reshape(C, 1)   # broadcast-ready column; trivial reshape

    # Advisory hint so XLA schedules this custom call as the tiny op it is.
    cost = pl.CostEstimate(
        flops=2 * B * C * (F * (Na + Nb) + (Na + Nb) * K),
        transcendentals=B * C * K,
        bytes_accessed=4 * (vectors_a.size + vectors_b.size + weight.size
                            + bias.size + B * C * K),
    )

    out_flat = pl.pallas_call(
        _connect_kernel,
        out_shape=jax.ShapeDtypeStruct((B, C, K), jnp.float32),
        grid_spec=pltpu.PrefetchScalarGridSpec(
            num_scalar_prefetch=0,
            grid=(1,),   # single step: problem is fixed-overhead bound, not tiled
            in_specs=[
                pl.BlockSpec((B, F, Na, None), lambda i: (0, 0, 0, 0)),  # vectors_a
                pl.BlockSpec((B, F, Nb, None), lambda i: (0, 0, 0, 0)),  # vectors_b
                pl.BlockSpec((C, 2 * F), lambda i: (0, 0)),              # weight
                pl.BlockSpec((C, 1), lambda i: (0, 0)),                  # bias
            ],
            out_specs=pl.BlockSpec((B, C, K), lambda i: (0, 0, 0)),
        ),
        compiler_params=pltpu.CompilerParams(
            dimension_semantics=("arbitrary",)),
        cost_estimate=cost,
    )(vectors_a, vectors_b, weight, bias2d)

    # Free reshape back to the PyTorch output layout (minor-dim split).
    return out_flat.reshape(B, C, Na, Nb)


def _reference(vectors_a, vectors_b, weight, bias):
    """Pure-JAX reference mirroring the PyTorch double loop (vectorized)."""
    a = vectors_a[..., 0]                         # (B, F, Na)
    b = vectors_b[..., 0]                         # (B, F, Nb)
    F = a.shape[1]
    w_b, w_a = weight[:, :F], weight[:, F:]
    sa = jnp.einsum('cf,bfj->bcj', w_a, a)        # (B, C, Na)
    sb = jnp.einsum('cf,bfi->bci', w_b, b)        # (B, C, Nb)
    logits = sa[:, :, :, None] + sb[:, :, None, :] + bias[None, :, None, None]
    return jax.nn.sigmoid(logits)


if __name__ == "__main__":
    key = jax.random.PRNGKey(0)
    B, F, Na, Nb, C = 2, 8, 16, 16, 4   # features_size=8, connections_classes=4

    k1, k2, k3, k4 = jax.random.split(key, 4)
    vectors_a = jax.random.normal(k1, (B, F, Na, 1), dtype=jnp.float32)
    vectors_b = jax.random.normal(k2, (B, F, Nb, 1), dtype=jnp.float32)

    # Deterministic Linear(2F -> C) params (PyTorch-style uniform init range).
    bound = 1.0 / jnp.sqrt(2.0 * F)
    weight = jax.random.uniform(k3, (C, 2 * F), minval=-bound, maxval=bound,
                                dtype=jnp.float32)
    bias = jax.random.uniform(k4, (C,), minval=-bound, maxval=bound,
                              dtype=jnp.float32)

    out = connect_net_v3_forward(vectors_a, vectors_b, weight, bias)
    out = jax.block_until_ready(out)

    ref = _reference(vectors_a, vectors_b, weight, bias)
    assert out.shape == (B, C, Na, Nb)
    # Exact sigmoid now (no approx reciprocal); remaining tolerance only covers
    # default-precision f32 MXU pass differences between kernel and XLA ref.
    assert jnp.allclose(out, ref, atol=1e-3, rtol=1e-3), \
        float(jnp.max(jnp.abs(out - ref)))
    print("KERNEL_OK")
</pallas_src>

<mosaic_0001>
module attributes {stable_mosaic.version = 11 : i64} {
  func.func @_connect_kernel(%arg0: i32, %arg1: memref<2x8x16x1xf32, #tpu.memory_space<vmem>>, %arg2: memref<2x8x16x1xf32, #tpu.memory_space<vmem>>, %arg3: memref<4x16xf32, #tpu.memory_space<vmem>>, %arg4: memref<4x1xf32, #tpu.memory_space<vmem>>, %arg5: memref<2x4x256xf32, #tpu.memory_space<vmem>>) attributes {dimension_semantics = [#tpu.dimension_semantics<arbitrary>], iteration_bounds = array<i64: 1>, scalar_prefetch = 0 : i64, scratch_operands = 0 : i64, tpu.core_type = #tpu.core_type<tc>, window_params = [{pipeline_mode = #tpu.pipeline_mode<synchronous>, transform_indices = @transform_0, window_bounds = array<i64: 2, 8, 16, 1>}, {pipeline_mode = #tpu.pipeline_mode<synchronous>, transform_indices = @transform_1, window_bounds = array<i64: 2, 8, 16, 1>}, {pipeline_mode = #tpu.pipeline_mode<synchronous>, transform_indices = @transform_2, window_bounds = array<i64: 4, 16>}, {pipeline_mode = #tpu.pipeline_mode<synchronous>, transform_indices = @transform_3, window_bounds = array<i64: 4, 1>}, {pipeline_mode = #tpu.pipeline_mode<synchronous>, transform_indices = @transform_4, window_bounds = array<i64: 2, 4, 256>}]} {
    %c0 = arith.constant 0 : index
    %c0_0 = arith.constant 0 : index
    %0 = vector.load %arg3[%c0, %c0_0] : memref<4x16xf32, #tpu.memory_space<vmem>>, vector<4x8xf32>
    %c0_1 = arith.constant 0 : index
    %c8 = arith.constant 8 : index
    %1 = vector.load %arg3[%c0_1, %c8] : memref<4x16xf32, #tpu.memory_space<vmem>>, vector<4x8xf32>
    %c0_2 = arith.constant 0 : index
    %c0_3 = arith.constant 0 : index
    %2 = vector.load %arg4[%c0_2, %c0_3] : memref<4x1xf32, #tpu.memory_space<vmem>>, vector<4x1xf32>
    %3 = tpu.iota {dimensions = array<i32: 0>} : vector<16x256xi32>
    %4 = tpu.iota {dimensions = array<i32: 1>} : vector<16x256xi32>
    %c16_i32 = arith.constant 16 : i32
    %5 = vector.broadcast %c16_i32 : i32 to vector<16x256xi32>
    %6 = arith.muli %3, %5 : vector<16x256xi32>
    %7 = arith.subi %4, %6 : vector<16x256xi32>
    %c0_i32 = arith.constant 0 : i32
    %8 = vector.broadcast %c0_i32 : i32 to vector<16x256xi32>
    %9 = arith.cmpi sge, %7, %8 : vector<16x256xi32>
    %c16_i32_4 = arith.constant 16 : i32
    %10 = vector.broadcast %c16_i32_4 : i32 to vector<16x256xi32>
    %11 = arith.cmpi slt, %7, %10 : vector<16x256xi32>
    %12 = arith.andi %9, %11 : vector<16x256xi1>
    %13 = arith.extui %12 : vector<16x256xi1> to vector<16x256xi32>
    %14 = arith.sitofp %13 : vector<16x256xi32> to vector<16x256xf32>
    %15 = tpu.iota {dimensions = array<i32: 0>} : vector<16x256xi32>
    %16 = tpu.iota {dimensions = array<i32: 1>} : vector<16x256xi32>
    %c15_i32 = arith.constant 15 : i32
    %17 = vector.broadcast %c15_i32 : i32 to vector<16x256xi32>
    %18 = arith.andi %16, %17 : vector<16x256xi32>
    %19 = arith.cmpi eq, %18, %15 : vector<16x256xi32>
    %20 = arith.extui %19 : vector<16x256xi1> to vector<16x256xi32>
    %21 = arith.sitofp %20 : vector<16x256xi32> to vector<16x256xf32>
    %c0_5 = arith.constant 0 : index
    %c0_6 = arith.constant 0 : index
    %c0_7 = arith.constant 0 : index
    %c0_8 = arith.constant 0 : index
    %22 = vector.load %arg2[%c0_5, %c0_6, %c0_7, %c0_8] : memref<2x8x16x1xf32, #tpu.memory_space<vmem>>, vector<1x8x16x1xf32>
    %23 = vector.shape_cast %22 : vector<1x8x16x1xf32> to vector<8x16xf32>
    %cst = arith.constant dense<0.000000e+00> : vector<4x16xf32>
    %24 = tpu.matmul %0, %23, %cst {dimension_numbers = #tpu.dot_dimension_numbers<[1], [0], [0], [1], [0, 0, 1, 1], [], []>} : vector<4x8xf32>, vector<8x16xf32>, vector<4x16xf32> -> vector<4x16xf32>
    %c0_9 = arith.constant 0 : index
    %c0_10 = arith.constant 0 : index
    %c0_11 = arith.constant 0 : index
    %c0_12 = arith.constant 0 : index
    %25 = vector.load %arg1[%c0_9, %c0_10, %c0_11, %c0_12] : memref<2x8x16x1xf32, #tpu.memory_space<vmem>>, vector<1x8x16x1xf32>
    %26 = vector.shape_cast %25 : vector<1x8x16x1xf32> to vector<8x16xf32>
    %cst_13 = arith.constant dense<0.000000e+00> : vector<4x16xf32>
    %27 = tpu.matmul %1, %26, %cst_13 {dimension_numbers = #tpu.dot_dimension_numbers<[1], [0], [0], [1], [0, 0, 1, 1], [], []>} : vector<4x8xf32>, vector<8x16xf32>, vector<4x16xf32> -> vector<4x16xf32>
    %28 = vector.broadcast %2 : vector<4x1xf32> to vector<4x16xf32>
    %29 = arith.addf %27, %28 : vector<4x16xf32>
    %cst_14 = arith.constant dense<0.000000e+00> : vector<4x256xf32>
    %30 = tpu.matmul %29, %14, %cst_14 {dimension_numbers = #tpu.dot_dimension_numbers<[1], [0], [0], [1], [0, 0, 1, 1], [], []>} : vector<4x16xf32>, vector<16x256xf32>, vector<4x256xf32> -> vector<4x256xf32>
    %cst_15 = arith.constant dense<0.000000e+00> : vector<4x256xf32>
    %31 = tpu.matmul %24, %21, %cst_15 {dimension_numbers = #tpu.dot_dimension_numbers<[1], [0], [0], [1], [0, 0, 1, 1], [], []>} : vector<4x16xf32>, vector<16x256xf32>, vector<4x256xf32> -> vector<4x256xf32>
    %32 = arith.addf %30, %31 : vector<4x256xf32>
    %cst_16 = arith.constant 5.000000e-01 : f32
    %33 = vector.broadcast %cst_16 : f32 to vector<4x256xf32>
    %34 = arith.mulf %33, %32 : vector<4x256xf32>
    %35 = math.tanh %34 : vector<4x256xf32>
    %cst_17 = arith.constant 5.000000e-01 : f32
    %36 = vector.broadcast %cst_17 : f32 to vector<4x256xf32>
    %37 = arith.mulf %36, %35 : vector<4x256xf32>
    %cst_18 = arith.constant 5.000000e-01 : f32
    %38 = vector.broadcast %cst_18 : f32 to vector<4x256xf32>
    %39 = arith.addf %37, %38 : vector<4x256xf32>
    %c0_19 = arith.constant 0 : index
    %c0_20 = arith.constant 0 : index
    %c0_21 = arith.constant 0 : index
    %40 = vector.load %arg5[%c0_19, %c0_20, %c0_21] : memref<2x4x256xf32, #tpu.memory_space<vmem>>, vector<1x4x256xf32>
    %41 = vector.shape_cast %40 : vector<1x4x256xf32> to vector<4x256xf32>
    %42 = vector.shape_cast %39 : vector<4x256xf32> to vector<1x4x256xf32>
    tpu.vector_store %arg5[%c0_19, %c0_20, %c0_21], %42 {strides = array<i32>} : memref<2x4x256xf32, #tpu.memory_space<vmem>>, vector<1x4x256xf32>,
    %c1 = arith.constant 1 : index
    %c0_22 = arith.constant 0 : index
    %c0_23 = arith.constant 0 : index
    %c0_24 = arith.constant 0 : index
    %43 = vector.load %arg2[%c1, %c0_22, %c0_23, %c0_24] : memref<2x8x16x1xf32, #tpu.memory_space<vmem>>, vector<1x8x16x1xf32>
    %44 = vector.shape_cast %43 : vector<1x8x16x1xf32> to vector<8x16xf32>
    %cst_25 = arith.constant dense<0.000000e+00> : vector<4x16xf32>
    %45 = tpu.matmul %0, %44, %cst_25 {dimension_numbers = #tpu.dot_dimension_numbers<[1], [0], [0], [1], [0, 0, 1, 1], [], []>} : vector<4x8xf32>, vector<8x16xf32>, vector<4x16xf32> -> vector<4x16xf32>
    %c1_26 = arith.constant 1 : index
    %c0_27 = arith.constant 0 : index
    %c0_28 = arith.constant 0 : index
    %c0_29 = arith.constant 0 : index
    %46 = vector.load %arg1[%c1_26, %c0_27, %c0_28, %c0_29] : memref<2x8x16x1xf32, #tpu.memory_space<vmem>>, vector<1x8x16x1xf32>
    %47 = vector.shape_cast %46 : vector<1x8x16x1xf32> to vector<8x16xf32>
    %cst_30 = arith.constant dense<0.000000e+00> : vector<4x16xf32>
    %48 = tpu.matmul %1, %47, %cst_30 {dimension_numbers = #tpu.dot_dimension_numbers<[1], [0], [0], [1], [0, 0, 1, 1], [], []>} : vector<4x8xf32>, vector<8x16xf32>, vector<4x16xf32> -> vector<4x16xf32>
    %49 = vector.broadcast %2 : vector<4x1xf32> to vector<4x16xf32>
    %50 = arith.addf %48, %49 : vector<4x16xf32>
    %cst_31 = arith.constant dense<0.000000e+00> : vector<4x256xf32>
    %51 = tpu.matmul %50, %14, %cst_31 {dimension_numbers = #tpu.dot_dimension_numbers<[1], [0], [0], [1], [0, 0, 1, 1], [], []>} : vector<4x16xf32>, vector<16x256xf32>, vector<4x256xf32> -> vector<4x256xf32>
    %cst_32 = arith.constant dense<0.000000e+00> : vector<4x256xf32>
    %52 = tpu.matmul %45, %21, %cst_32 {dimension_numbers = #tpu.dot_dimension_numbers<[1], [0], [0], [1], [0, 0, 1, 1], [], []>} : vector<4x16xf32>, vector<16x256xf32>, vector<4x256xf32> -> vector<4x256xf32>
    %53 = arith.addf %51, %52 : vector<4x256xf32>
    %cst_33 = arith.constant 5.000000e-01 : f32
    %54 = vector.broadcast %cst_33 : f32 to vector<4x256xf32>
    %55 = arith.mulf %54, %53 : vector<4x256xf32>
    %56 = math.tanh %55 : vector<4x256xf32>
    %cst_34 = arith.constant 5.000000e-01 : f32
    %57 = vector.broadcast %cst_34 : f32 to vector<4x256xf32>
    %58 = arith.mulf %57, %56 : vector<4x256xf32>
    %cst_35 = arith.constant 5.000000e-01 : f32
    %59 = vector.broadcast %cst_35 : f32 to vector<4x256xf32>
    %60 = arith.addf %58, %59 : vector<4x256xf32>
    %c1_36 = arith.constant 1 : index
    %c0_37 = arith.constant 0 : index
    %c0_38 = arith.constant 0 : index
    %61 = vector.load %arg5[%c1_36, %c0_37, %c0_38] : memref<2x4x256xf32, #tpu.memory_space<vmem>>, vector<1x4x256xf32>
    %62 = vector.shape_cast %61 : vector<1x4x256xf32> to vector<4x256xf32>
    %63 = vector.shape_cast %60 : vector<4x256xf32> to vector<1x4x256xf32>
    tpu.vector_store %arg5[%c1_36, %c0_37, %c0_38], %63 {strides = array<i32>} : memref<2x4x256xf32, #tpu.memory_space<vmem>>, vector<1x4x256xf32>,
    return
  }
  func.func @transform_0(%arg0: i32) -> (i32, i32, i32, i32) {
    %c0_i32 = arith.constant 0 : i32
    %c0_i32_0 = arith.constant 0 : i32
    %c0_i32_1 = arith.constant 0 : i32
    %c0_i32_2 = arith.constant 0 : i32
    %c0_i32_3 = arith.constant 0 : i32
    return %c0_i32, %c0_i32_0, %c0_i32_1, %c0_i32_2 : i32, i32, i32, i32
  }
  func.func @transform_1(%arg0: i32) -> (i32, i32, i32, i32) {
    %c0_i32 = arith.constant 0 : i32
    %c0_i32_0 = arith.constant 0 : i32
    %c0_i32_1 = arith.constant 0 : i32
    %c0_i32_2 = arith.constant 0 : i32
    %c0_i32_3 = arith.constant 0 : i32
    return %c0_i32, %c0_i32_0, %c0_i32_1, %c0_i32_2 : i32, i32, i32, i32
  }
  func.func @transform_2(%arg0: i32) -> (i32, i32) {
    %c0_i32 = arith.constant 0 : i32
    %c0_i32_0 = arith.constant 0 : i32
    %c0_i32_1 = arith.constant 0 : i32
    return %c0_i32, %c0_i32_0 : i32, i32
  }
  func.func @transform_3(%arg0: i32) -> (i32, i32) {
    %c0_i32 = arith.constant 0 : i32
    %c0_i32_0 = arith.constant 0 : i32
    %c0_i32_1 = arith.constant 0 : i32
    return %c0_i32, %c0_i32_0 : i32, i32
  }
  func.func @transform_4(%arg0: i32) -> (i32, i32, i32) {
    %c0_i32 = arith.constant 0 : i32
    %c0_i32_0 = arith.constant 0 : i32
    %c0_i32_1 = arith.constant 0 : i32
    %c0_i32_2 = arith.constant 0 : i32
    return %c0_i32, %c0_i32_0, %c0_i32_1 : i32, i32, i32
  }
}

</mosaic_0001>

<bundles_post_ra>
// kernel: tpu_custom_call.1
= control target key start
LH: loop header
LB: loop body
LE: loop exit
PB: predicated region body
PF: predicated region fallthrough
CT: control target
= control target key end

     0   :  { %v1504_v2 = vmov 0   ;;  %s2029_s0 = inlined_call_operand.vmem [shape: f32[2,8,16,1], index: 0, kind: input, shape index: {}]   ;;  %s2030_s1 = inlined_call_operand.vmem [shape: f32[2,8,16,1], index: 1, kind: input, shape index: {}]   ;;  %s2031_s2 = inlined_call_operand.vmem [shape: f32[4,16], index: 2, kind: input, shape index: {}]   ;;  %s2032_s3 = inlined_call_operand.vmem [shape: f32[4,1], index: 3, kind: input, shape index: {}]   ;;  %s2033_s4 = inlined_call_operand.hbm [shape: f32[2,4,256], index: 4, kind: output, shape index: {}]  }
   0x1   :  { %v68_v0 = vld [vmem:[%s2030_s1 + $0x10] sm:$0xff]  ;;  %v66_v1 = vld [vmem:[%s2030_s1] sm:$0xff]  ;;  %1471 = vset.pattern.permute.xlu1 %v1504_v2  ;;  %1470 = vset.pattern.permute.xlu0 %v1504_v2  ;;  %v69_v3 = vld [vmem:[%s2030_s1 + $0x18] sm:$0xff] }
   0x2   :  { %105 = vperm.xlu1 %1471, %v68_v0   ;;  %99 = vperm.xlu0 %1470, %v66_v1   ;;  %v67_v4 = vld [vmem:[%s2030_s1 + $0x8] sm:$0xff]  ;;  %v70_v6 = vld [vmem:[%s2030_s1 + $0x20] sm:$0xff]  ;;  %v73_v7 = vld [vmem:[%s2030_s1 + $0x38] sm:$0xff] }
   0x3   :  { %v71_v5 = vld [vmem:[%s2030_s1 + $0x28] sm:$0xff]  ;;  %v72_v8 = vld [vmem:[%s2030_s1 + $0x30] sm:$0xff]  ;;  %v74_v10 = vld [vmem:[%s2030_s1 + $0x40] sm:$0xff] }
   0x4   :  { %v75_v9 = vld [vmem:[%s2030_s1 + $0x48] sm:$0xff]  ;;  %v77_v11 = vld [vmem:[%s2030_s1 + $0x58] sm:$0xff]  ;;  %v76_v12 = vld [vmem:[%s2030_s1 + $0x50] sm:$0xff] }
   0x6   :  { %108 = vperm.xlu1 %1471, %v69_v3   ;;  %102 = vperm.xlu0 %1470, %v67_v4  }
   0xa   :  { %114 = vperm.xlu1 %1471, %v71_v5   ;;  %111 = vperm.xlu0 %1470, %v70_v6  }
   0xe   :  { %120 = vperm.xlu1 %1471, %v73_v7   ;;  %117 = vperm.xlu0 %1470, %v72_v8  }
  0x12   :  { %126 = vperm.xlu1 %1471, %v75_v9   ;;  %123 = vperm.xlu0 %1470, %v74_v10  }
  0x16   :  { %132 = vperm.xlu1 %1471, %v77_v11   ;;  %129 = vperm.xlu0 %1470, %v76_v12  }
  0x17   :  { %9 = vsyncpa [#allocation3], 0  ;;  %v79_v13 = vld [vmem:[%s2030_s1 + $0x68] sm:$0xff]  ;;  %v78_v14 = vld [vmem:[%s2030_s1 + $0x60] sm:$0xff]  ;;  %v1505_v19 = vmov 0.0   ;;  %vm1506_vm0 = vmmov 0   ;;  %v20_v8 = vlaneseq }
  0x18   :  { %v81_v15 = vld [vmem:[%s2030_s1 + $0x78] sm:$0xff]  ;;  %v80_v16 = vld [vmem:[%s2030_s1 + $0x70] sm:$0xff]  ;;  %v310_v17 = vld [vmem:[%s2029_s0 + $0x8] sm:$0xff]  ;;  %1422 = vmatprep.subr.mxu0 %v1505_v19  ;;  %1427 = vmatprep.subr.mxu1 %v1505_v19  ;;  %s1507_s30 = smov 120   ;;  %vm155_vm1 = vcmask 130112   ;;  %vm220_vm2 = vcmask 1041409  }
  0x19   :  { %v309_v18 = vld [vmem:[%s2029_s0] sm:$0xff]  ;;  %v312_v20 = vld [vmem:[%s2029_s0 + $0x18] sm:$0xff]  ;;  %v311_v21 = vld [vmem:[%s2029_s0 + $0x10] sm:$0xff]  ;;  %1424 = vmatprep.mubr.msk.f32.mxu0 %vm1506_vm0, %v1505_v19  ;;  %1429 = vmatprep.mubr.msk.f32.mxu1 %vm1506_vm0, %v1505_v19  ;;  %v1744_v11 = vand.u32 127, %v20_v8  ;;  %vm222_vm3 = vcmask 1042434   ;;  %vm224_vm4 = vcmask 1043459  }
  0x1a   :  { %138 = vperm.xlu1 %1471, %v79_v13   ;;  %135 = vperm.xlu0 %1470, %v78_v14   ;;  %v314_v22 = vld [vmem:[%s2029_s0 + $0x28] sm:$0xff]  ;;  %v313_v23 = vld [vmem:[%s2029_s0 + $0x20] sm:$0xff]  ;;  %v316_v24 = vld [vmem:[%s2029_s0 + $0x38] sm:$0xff]  ;;  %vm226_vm5 = vcmask 1044484   ;;  %vm2038_vm6 = vcmask 1045509   ;;  %vm2037_vm7 = vcmask 1046534  }
  0x1b   :  { %v315_v25 = vld [vmem:[%s2029_s0 + $0x30] sm:$0xff]  ;;  %v318_v26 = vld [vmem:[%s2029_s0 + $0x48] sm:$0xff]  ;;  %v317_v27 = vld [vmem:[%s2029_s0 + $0x40] sm:$0xff]  ;;  %v150_v12 = vadd.s32 4294967288, %v1744_v11  ;;  %vm2034_vm8 = vcmask 1047559   ;;  %vm2036_vm9 = vcmask 64512  }
  0x1c   :  { %v320_v28 = vld [vmem:[%s2029_s0 + $0x58] sm:$0xff]  ;;  %v319_v29 = vld [vmem:[%s2029_s0 + $0x50] sm:$0xff]  ;;  %v322_v30 = vld [vmem:[%s2029_s0 + $0x68] sm:$0xff] }
  0x1d   :  { %v321_v31 = vld [vmem:[%s2029_s0 + $0x60] sm:$0xff]  ;;  %v324_v32 = vld [vmem:[%s2029_s0 + $0x78] sm:$0xff]  ;;  %v323_v33 = vld [vmem:[%s2029_s0 + $0x70] sm:$0xff] }
  0x1e   :  { %144 = vperm.xlu1 %1471, %v81_v15   ;;  %141 = vperm.xlu0 %1470, %v80_v16   ;;  %v1371_v34 = vld [vmem:[%s2030_s1 + $0x88] sm:$0xff]  ;;  %v1370_v35 = vld [vmem:[%s2030_s1 + $0x80] sm:$0xff]  ;;  %v1373_v36 = vld [vmem:[%s2030_s1 + $0x98] sm:$0xff]  ;;  %v1747_v15 = vshrl.u32 %v20_v8, 7 }
  0x1f   :  { %v1372_v37 = vld [vmem:[%s2030_s1 + $0x90] sm:$0xff]  ;;  %v1375_v38 = vld [vmem:[%s2030_s1 + $0xa8] sm:$0xff]  ;;  %v1374_v39 = vld [vmem:[%s2030_s1 + $0xa0] sm:$0xff] }
  0x20   :  { %v1377_v40 = vld [vmem:[%s2030_s1 + $0xb8] sm:$0xff]  ;;  %v1376_v41 = vld [vmem:[%s2030_s1 + $0xb0] sm:$0xff]  ;;  %v1379_v42 = vld [vmem:[%s2030_s1 + $0xc8] sm:$0xff]  ;;  %v1750_v16 = vsub.s32 %v150_v12, %v1747_v15  ;;  %v1795_v12 = vadd.s32 128, %v1744_v11 }
  0x21   :  { %v1378_v43 = vld [vmem:[%s2030_s1 + $0xc0] sm:$0xff]  ;;  %v1381_v44 = vld [vmem:[%s2030_s1 + $0xd8] sm:$0xff]  ;;  %v1380_v45 = vld [vmem:[%s2030_s1 + $0xd0] sm:$0xff] }
  0x22   :  { %352 = vperm.xlu1 %1471, %v310_v17   ;;  %349 = vperm.xlu0 %1470, %v309_v18   ;;  %v1383_v46 = vld [vmem:[%s2030_s1 + $0xe8] sm:$0xff]  ;;  %v1382_v47 = vld [vmem:[%s2030_s1 + $0xe0] sm:$0xff]  ;;  %v1385_v48 = vld [vmem:[%s2030_s1 + $0xf8] sm:$0xff] }
  0x23   :  { %v1384_v49 = vld [vmem:[%s2030_s1 + $0xf0] sm:$0xff]  ;;  %v1388_v50 = vld [vmem:[%s2029_s0 + $0x88] sm:$0xff]  ;;  %v1387_v51 = vld [vmem:[%s2029_s0 + $0x80] sm:$0xff] }
  0x24   :  { %v1390_v52 = vld [vmem:[%s2029_s0 + $0x98] sm:$0xff]  ;;  %v1389_v53 = vld [vmem:[%s2029_s0 + $0x90] sm:$0xff]  ;;  %v1392_v54 = vld [vmem:[%s2029_s0 + $0xa8] sm:$0xff] }
  0x25   :  { %v1391_v55 = vld [vmem:[%s2029_s0 + $0xa0] sm:$0xff]  ;;  %v1394_v56 = vld [vmem:[%s2029_s0 + $0xb8] sm:$0xff]  ;;  %v1393_v57 = vld [vmem:[%s2029_s0 + $0xb0] sm:$0xff] }
  0x26   :  { %358 = vperm.xlu1 %1471, %v312_v20   ;;  %355 = vperm.xlu0 %1470, %v311_v21   ;;  %v1396_v58 = vld [vmem:[%s2029_s0 + $0xc8] sm:$0xff]  ;;  %v1395_v59 = vld [vmem:[%s2029_s0 + $0xc0] sm:$0xff]  ;;  %v1397_v60 = vld [vmem:[%s2029_s0 + $0xd0] sm:$0xff]  ;;  %v1754_v20 = vsub.s32 %v1744_v11, %v1747_v15 }
  0x27   :  { %v1723_v61 = vld [vmem:[%s2031_s2] sm:$0xf]  ;;  %v1398_v63 = vld [vmem:[%s2029_s0 + $0xd8] sm:$0xff]  ;;  %v1401_v0 = vld [vmem:[%s2029_s0 + $0xf0] sm:$0xff] }
  0x28   :  { %v1399_v62 = vld [vmem:[%s2029_s0 + $0xe0] sm:$0xff]  ;;  %v1400_v1 = vld [vmem:[%s2029_s0 + $0xe8] sm:$0xff]  ;;  %v1402_v3 = vld [vmem:[%s2029_s0 + $0xf8] sm:$0xff]  ;;  %s1509_s0 = smov [#allocation2]  }
  0x29   :  { %v19_v2 = vld [vmem:[%s2032_s3] sm:$0xf]  ;;  %s1339_s3 = sshll.u32 %s1509_s0, 4  ;;  %s1340_s3 = int_to_ptr.vmem [resolvable:$true] %s1339_s3 }
  0x2a   :  { %364 = vperm.xlu1 %1471, %v314_v22   ;;  %361 = vperm.xlu0 %1470, %v313_v23   ;;  %s1480_s15 = scalar_lea.vmem %s1340_s3, 256  ;;  %p1485_p1 = scmp.lt.s32.totalorder %s1340_s3, %s1340_s3 }
  0x2b   :  { %p1481_p0 = scmp.ne.s32.totalorder %s1340_s3, %s1480_s15  ;;  %p1486_p2 = scmp.lt.s32.totalorder %s1480_s15, %s1480_s15 }
  0x2d   :  { %p1487_p3 = por %p1486_p2, %p1485_p1 }
  0x2e   :  { %370 = vperm.xlu1 %1471, %v316_v24   ;;  %367 = vperm.xlu0 %1470, %v315_v25  }
  0x2f   :  { %p1488_p4 = pnand %p1487_p3, %p1481_p0 }
  0x32   :  { %376 = vperm.xlu1 %1471, %v318_v26   ;;  %373 = vperm.xlu0 %1470, %v317_v27  }
  0x36   :  { %382 = vperm.xlu1 %1471, %v320_v28   ;;  %379 = vperm.xlu0 %1470, %v319_v29  }
  0x3a   :  { %388 = vperm.xlu1 %1471, %v322_v30   ;;  %385 = vperm.xlu0 %1470, %v321_v31  }
  0x3e   :  { %394 = vperm.xlu1 %1471, %v324_v32   ;;  %391 = vperm.xlu0 %1470, %v323_v33  }
  0x42   :  { %747 = vperm.xlu1 %1471, %v1371_v34   ;;  %744 = vperm.xlu0 %1470, %v1370_v35  }
  0x46   :  { %753 = vperm.xlu1 %1471, %v1373_v36   ;;  %750 = vperm.xlu0 %1470, %v1372_v37  }
  0x4a   :  { %759 = vperm.xlu1 %1471, %v1375_v38   ;;  %756 = vperm.xlu0 %1470, %v1374_v39  }
  0x4e   :  { %765 = vperm.xlu1 %1471, %v1377_v40   ;;  %762 = vperm.xlu0 %1470, %v1376_v41  }
  0x52   :  { %771 = vperm.xlu1 %1471, %v1379_v42   ;;  %768 = vperm.xlu0 %1470, %v1378_v43  }
  0x56   :  { %777 = vperm.xlu1 %1471, %v1381_v44   ;;  %774 = vperm.xlu0 %1470, %v1380_v45  }
  0x5a   :  { %783 = vperm.xlu1 %1471, %v1383_v46   ;;  %780 = vperm.xlu0 %1470, %v1382_v47  }
  0x5e   :  { %789 = vperm.xlu1 %1471, %v1385_v48   ;;  %786 = vperm.xlu0 %1470, %v1384_v49  }
  0x62   :  { %978 = vperm.xlu1 %1471, %v1388_v50   ;;  %975 = vperm.xlu0 %1470, %v1387_v51  }
  0x66   :  { %984 = vperm.xlu1 %1471, %v1390_v52   ;;  %981 = vperm.xlu0 %1470, %v1389_v53  }
  0x6a   :  { %990 = vperm.xlu1 %1471, %v1392_v54   ;;  %987 = vperm.xlu0 %1470, %v1391_v55  }
  0x6e   :  { %996 = vperm.xlu1 %1471, %v1394_v56   ;;  %993 = vperm.xlu0 %1470, %v1393_v57  }
  0x72   :  { %1002 = vperm.xlu1 %1471, %v1396_v58   ;;  %999 = vperm.xlu0 %1470, %v1395_v59  }
  0x76   :  { %1005 = vperm.xlu1 %1471, %v1397_v60   ;;  %330 = vrot.lane.b32.xlu0 %v1723_v61, %s1507_s30 }
  0x7a   :  { %1011 = vperm.xlu1 %1471, %v1399_v62   ;;  %1008 = vperm.xlu0 %1470, %v1398_v63  }
  0x7e   :  { %1017 = vperm.xlu1 %1471, %v1401_v0   ;;  %1014 = vperm.xlu0 %1470, %v1400_v1  }
  0x81   :  { %v106_v4 = vpop.permute.xlu1 %105  ;;  %v100_v5 = vpop.permute.xlu0 %99 }
  0x82   :  { %327 = vperm.xlu1 %1471, %v19_v2   ;;  %1020 = vperm.xlu0 %1470, %v1402_v3   ;;  %v160_v27 = vrot.slane %v106_v4, %v1754_v20  ;;  %v149_v28 = vrot.slane %v100_v5, %v1754_v20 }
  0x85   :  { %v109_v6 = vpop.permute.xlu1 %108  ;;  %v103_v7 = vpop.permute.xlu0 %102 }
  0x86   :  { %v164_v21 = vrot.slane %v109_v6, %v1750_v16  ;;  %v154_v22 = vrot.slane %v103_v7, %v1750_v16 }
  0x88   :  { %v165_v33 = vsel %vm155_vm1, %v164_v21, %v160_v27  ;;  %v156_v34 = vsel %vm155_vm1, %v154_v22, %v149_v28 }
  0x89   :  { %v115_v9 = vpop.permute.xlu1 %114  ;;  %v112_v10 = vpop.permute.xlu0 %111  ;;  %v221_v43 = vsel %vm220_vm2, %v165_v33, %v156_v34 }
  0x8a   :  { %v173_v23 = vrot.slane %v115_v9, %v1750_v16  ;;  %v169_v24 = vrot.slane %v112_v10, %v1754_v20 }
  0x8c   :  { %v174_v37 = vsel %vm155_vm1, %v173_v23, %v169_v24 }
  0x8d   :  { %v121_v13 = vpop.permute.xlu1 %120  ;;  %v118_v14 = vpop.permute.xlu0 %117  ;;  %v223_v45 = vsel %vm222_vm3, %v174_v37, %v221_v43 }
  0x8e   :  { %v182_v29 = vrot.slane %v121_v13, %v1750_v16  ;;  %v178_v30 = vrot.slane %v118_v14, %v1754_v20 }
  0x90   :  { %v183_v40 = vsel %vm155_vm1, %v182_v29, %v178_v30  ;;  %v1808_v29 = vadd.s32 8, %v1747_v15  ;;  %v53_v30 = vand.u32 15, %v1795_v12 }
  0x91   :  { %v127_v17 = vpop.permute.xlu1 %126  ;;  %v124_v18 = vpop.permute.xlu0 %123  ;;  %v225_v47 = vsel %vm224_vm4, %v183_v40, %v223_v45 }
  0x92   :  { %v191_v31 = vrot.slane %v127_v17, %v1750_v16  ;;  %v187_v32 = vrot.slane %v124_v18, %v1754_v20  ;;  %vm1822_vm10 = vcmp.eq.s32.totalorder %v53_v30, %v1747_v15  ;;  %vm1827_vm11 = vcmp.eq.s32.totalorder %v53_v30, %v1808_v29 }
  0x93   :  { %vm1442_vm12 = vmpackc.low %vm1827_vm11, %vm1822_vm10  ;;  %vm2056_vm10 = vcmask 1045509   ;;  %vm2057_vm11 = vcmask 1046534  }
  0x94   :  { %v192_v44 = vsel %vm155_vm1, %v191_v31, %v187_v32 }
  0x95   :  { %v133_v25 = vpop.permute.xlu1 %132  ;;  %v130_v26 = vpop.permute.xlu0 %129  ;;  %v227_v53 = vsel %vm226_vm5, %v192_v44, %v225_v47 }
  0x96   :  { %v200_v35 = vrot.slane %v133_v25, %v1750_v16  ;;  %v196_v36 = vrot.slane %v130_v26, %v1754_v20 }
  0x98   :  { %v201_v46 = vsel %vm155_vm1, %v200_v35, %v196_v36 }
  0x99   :  { %v139_v38 = vpop.permute.xlu1 %138  ;;  %v136_v39 = vpop.permute.xlu0 %135  ;;  %v229_v54 = vsel %vm2038_vm6, %v201_v46, %v227_v53 }
  0x9a   :  { %v209_v41 = vrot.slane %v139_v38, %v1750_v16  ;;  %v205_v42 = vrot.slane %v136_v39, %v1754_v20 }
  0x9c   :  { %v210_v50 = vsel %vm155_vm1, %v209_v41, %v205_v42 }
  0x9d   :  { %v145_v48 = vpop.permute.xlu1 %144  ;;  %v142_v49 = vpop.permute.xlu0 %141  ;;  %v231_v56 = vsel %vm2037_vm7, %v210_v50, %v229_v54  ;;  %v1508_v54 = vmov 1.0|1.0  }
  0x9e   :  { %v218_v51 = vrot.slane %v145_v48, %v1750_v16  ;;  %v214_v52 = vrot.slane %v142_v49, %v1754_v20 }
  0xa0   :  { %v219_v55 = vsel %vm155_vm1, %v218_v51, %v214_v52 }
  0xa1   :  { %v353_v57 = vpop.permute.xlu1 %352  ;;  %v350_v58 = vpop.permute.xlu0 %349  ;;  %v233_v59 = vsel %vm2034_vm8, %v219_v55, %v231_v56 }
  0xa2   :  { %1423 = vmatpush3.msra.mxu0 %v233_v59  ;;  %v403_v13 = vrot.slane %v353_v57, %v1750_v16  ;;  %v399_v14 = vrot.slane %v350_v58, %v1754_v20 }
  0xa3   :  { %1425 = vmatmul.mubr.msk.f32.vlgmr.msra.gmra.mrb[0].mxu0 %vm2036_vm9, %v1723_v61 }
  0xa4   :  { %690 = vmatprep.mubr.f32.mxu0 %v1505_v19  ;;  %v404_v31 = vsel %vm155_vm1, %v403_v13, %v399_v14 }
  0xa5   :  { %v359_v60 = vpop.permute.xlu1 %358  ;;  %v356_v62 = vpop.permute.xlu0 %355 }
  0xa6   :  { %v412_v5 = vrot.slane %v359_v60, %v1750_v16  ;;  %v408_v6 = vrot.slane %v356_v62, %v1754_v20 }
  0xa8   :  { %v413_v23 = vsel %vm155_vm1, %v412_v5, %v408_v6 }
  0xa9   :  { %v365_v63 = vpop.permute.xlu1 %364  ;;  %v362_v0 = vpop.permute.xlu0 %361  ;;  %v468_v35 = vsel %vm220_vm2, %v413_v23, %v404_v31 }
  0xaa   :  { %v421_v7 = vrot.slane %v365_v63, %v1750_v16  ;;  %v417_v8 = vrot.slane %v362_v0, %v1754_v20 }
  0xac   :  { %v422_v26 = vsel %vm155_vm1, %v421_v7, %v417_v8 }
  0xad   :  { %v371_v1 = vpop.permute.xlu1 %370  ;;  %v368_v2 = vpop.permute.xlu0 %367  ;;  %v469_v37 = vsel %vm222_vm3, %v422_v26, %v468_v35 }
  0xae   :  { %v430_v17 = vrot.slane %v371_v1, %v1750_v16  ;;  %v426_v18 = vrot.slane %v368_v2, %v1754_v20 }
  0xb0   :  { %v431_v32 = vsel %vm155_vm1, %v430_v17, %v426_v18 }
  0xb1   :  { %v377_v3 = vpop.permute.xlu1 %376  ;;  %v374_v4 = vpop.permute.xlu0 %373  ;;  %v470_v39 = vsel %vm224_vm4, %v431_v32, %v469_v37 }
  0xb2   :  { %v439_v21 = vrot.slane %v377_v3, %v1750_v16  ;;  %v435_v22 = vrot.slane %v374_v4, %v1754_v20 }
  0xb4   :  { %v440_v36 = vsel %vm155_vm1, %v439_v21, %v435_v22 }
  0xb5   :  { %v383_v9 = vpop.permute.xlu1 %382  ;;  %v380_v10 = vpop.permute.xlu0 %379  ;;  %v471_v47 = vsel %vm226_vm5, %v440_v36, %v470_v39 }
  0xb6   :  { %v448_v24 = vrot.slane %v383_v9, %v1750_v16  ;;  %v444_v25 = vrot.slane %v380_v10, %v1754_v20 }
  0xb8   :  { %v449_v38 = vsel %vm155_vm1, %v448_v24, %v444_v25 }
  0xb9   :  { %v389_v27 = vpop.permute.xlu1 %388  ;;  %v386_v28 = vpop.permute.xlu0 %385  ;;  %v472_v48 = vsel %vm2038_vm6, %v449_v38, %v471_v47 }
  0xba   :  { %v457_v33 = vrot.slane %v389_v27, %v1750_v16  ;;  %v453_v34 = vrot.slane %v386_v28, %v1754_v20 }
  0xbc   :  { %v458_v42 = vsel %vm155_vm1, %v457_v33, %v453_v34 }
  0xbd   :  { %v395_v40 = vpop.permute.xlu1 %394  ;;  %v392_v41 = vpop.permute.xlu0 %391  ;;  %v473_v50 = vsel %vm2037_vm7, %v458_v42, %v472_v48 }
  0xbe   :  { %v466_v45 = vrot.slane %v395_v40, %v1750_v16  ;;  %v462_v46 = vrot.slane %v392_v41, %v1754_v20 }
  0xc0   :  { %v467_v49 = vsel %vm155_vm1, %v466_v45, %v462_v46 }
  0xc1   :  { %v748_v51 = vpop.permute.xlu1 %747  ;;  %v745_v52 = vpop.permute.xlu0 %744  ;;  %v474_v53 = vsel %vm2034_vm8, %v467_v49, %v473_v50 }
  0xc2   :  { %1428 = vmatpush3.msra.mxu1 %v474_v53  ;;  %v798_v55 = vrot.slane %v748_v51, %v1750_v16  ;;  %v794_v56 = vrot.slane %v745_v52, %v1754_v20 }
  0xc3   :  { %1443 = vmatprep.subr.msk.bf16.mxu1 %vm1442_vm12, %v1508_v54 }
  0xc4   :  { %v799_v62 = vsel %vm155_vm1, %v798_v55, %v794_v56 }
  0xc5   :  { %v754_v57 = vpop.permute.xlu1 %753  ;;  %v751_v58 = vpop.permute.xlu0 %750 }
  0xc6   :  { %v807_v59 = vrot.slane %v754_v57, %v1750_v16  ;;  %v803_v60 = vrot.slane %v751_v58, %v1754_v20 }
  0xc8   :  { %v808_v63 = vsel %vm155_vm1, %v807_v59, %v803_v60 }
  0xc9   :  { %v863_v0 = vsel %vm220_vm2, %v808_v63, %v799_v62  ;;  %v760_v1 = vpop.permute.xlu1 %759  ;;  %v757_v2 = vpop.permute.xlu0 %756 }
  0xca   :  { %v816_v3 = vrot.slane %v760_v1, %v1750_v16  ;;  %v812_v4 = vrot.slane %v757_v2, %v1754_v20 }
  0xcc   :  { %v817_v5 = vsel %vm155_vm1, %v816_v3, %v812_v4  ;;  %v52_v3 = vand.u32 15, %v1744_v11 }
  0xcd   :  { %v864_v6 = vsel %vm222_vm3, %v817_v5, %v863_v0  ;;  %v766_v7 = vpop.permute.xlu1 %765  ;;  %v763_v8 = vpop.permute.xlu0 %762 }
  0xce   :  { %v825_v9 = vrot.slane %v766_v7, %v1750_v16  ;;  %v821_v10 = vrot.slane %v763_v8, %v1754_v20  ;;  %vm1898_vm13 = vcmp.eq.s32.totalorder %v52_v3, %v1747_v15  ;;  %vm1903_vm14 = vcmp.eq.s32.totalorder %v52_v3, %v1808_v29 }
  0xcf   :  { %vm2035_vm15 = vmpackc.low %vm1903_vm14, %vm1898_vm13 }
  0xd0   :  { %v826_v13 = vsel %vm155_vm1, %v825_v9, %v821_v10 }
  0xd1   :  { %v865_v14 = vsel %vm224_vm4, %v826_v13, %v864_v6  ;;  %v772_v17 = vpop.permute.xlu1 %771  ;;  %v769_v18 = vpop.permute.xlu0 %768 }
  0xd2   :  { %v834_v21 = vrot.slane %v772_v17, %v1750_v16  ;;  %v830_v22 = vrot.slane %v769_v18, %v1754_v20 }
  0xd4   :  { %v835_v23 = vsel %vm155_vm1, %v834_v21, %v830_v22 }
  0xd5   :  { %v866_v24 = vsel %vm226_vm5, %v835_v23, %v865_v14  ;;  %v778_v25 = vpop.permute.xlu1 %777  ;;  %v775_v26 = vpop.permute.xlu0 %774  ;;  %v26_v23 = vmul.u32 16, %v1747_v15 }
  0xd6   :  { %v843_v27 = vrot.slane %v778_v25, %v1750_v16  ;;  %v839_v28 = vrot.slane %v775_v26, %v1754_v20 }
  0xd7   :  { %v29_v25 = vsub.s32 %v1795_v12, %v26_v23  ;;  %v28_v15 = vsub.s32 %v1744_v11, %v26_v23 }
  0xd8   :  { %v844_v30 = vsel %vm155_vm1, %v843_v27, %v839_v28 }
  0xd9   :  { %v867_v31 = vsel %vm2038_vm6, %v844_v30, %v866_v24  ;;  %v784_v32 = vpop.permute.xlu1 %783  ;;  %v781_v33 = vpop.permute.xlu0 %780  ;;  %v27_v24 = vmul.u32 16, %v1808_v29 }
  0xda   :  { %v852_v34 = vrot.slane %v784_v32, %v1750_v16  ;;  %v848_v35 = vrot.slane %v781_v33, %v1754_v20 }
  0xdb   :  { %v31_v26 = vsub.s32 %v1795_v12, %v27_v24  ;;  %v30_v12 = vsub.s32 %v1744_v11, %v27_v24 }
  0xdc   :  { %v853_v36 = vsel %vm155_vm1, %v852_v34, %v848_v35 }
  0xdd   :  { %v790_v37 = vpop.permute.xlu1 %789  ;;  %v787_v38 = vpop.permute.xlu0 %786  ;;  %v868_v39 = vsel %vm2037_vm7, %v853_v36, %v867_v31 }
  0xde   :  { %v861_v40 = vrot.slane %v790_v37, %v1750_v16  ;;  %v857_v41 = vrot.slane %v787_v38, %v1754_v20 }
  0xe0   :  { %v862_v42 = vsel %vm155_vm1, %v861_v40, %v857_v41 }
  0xe1   :  { %v979_v45 = vpop.permute.xlu1 %978  ;;  %v976_v46 = vpop.permute.xlu0 %975  ;;  %v1879_v47 = vsel %vm2034_vm8, %v862_v42, %v868_v39 }
  0xe2   :  { %v1029_v48 = vrot.slane %v979_v45, %v1750_v16  ;;  %v1025_v49 = vrot.slane %v976_v46, %v1754_v20 }
  0xe4   :  { %v1030_v55 = vsel %vm155_vm1, %v1029_v48, %v1025_v49 }
  0xe5   :  { %v985_v50 = vpop.permute.xlu1 %984  ;;  %v982_v51 = vpop.permute.xlu0 %981 }
  0xe6   :  { %v1038_v52 = vrot.slane %v985_v50, %v1750_v16  ;;  %v1034_v53 = vrot.slane %v982_v51, %v1754_v20 }
  0xe8   :  { %v1039_v56 = vsel %vm155_vm1, %v1038_v52, %v1034_v53 }
  0xe9   :  { %v1094_v57 = vsel %vm220_vm2, %v1039_v56, %v1030_v55  ;;  %v991_v58 = vpop.permute.xlu1 %990  ;;  %v988_v59 = vpop.permute.xlu0 %987  ;;  %vm33_vm2 = vcmp.ge.s32.totalorder %v29_v25, 0 }
  0xea   :  { %v1047_v60 = vrot.slane %v991_v58, %v1750_v16  ;;  %v1043_v62 = vrot.slane %v988_v59, %v1754_v20 }
  0xec   :  { %v1048_v63 = vsel %vm155_vm1, %v1047_v60, %v1043_v62 }
  0xed   :  { %v1095_v0 = vsel %vm222_vm3, %v1048_v63, %v1094_v57  ;;  %v997_v1 = vpop.permute.xlu1 %996  ;;  %v994_v2 = vpop.permute.xlu0 %993  ;;  %vm35_vm3 = vcmp.ge.s32.totalorder %v31_v26, 0 }
  0xee   :  { %v1056_v4 = vrot.slane %v997_v1, %v1750_v16  ;;  %v1052_v5 = vrot.slane %v994_v2, %v1754_v20 }
  0xf0   :  { %v1057_v6 = vsel %vm155_vm1, %v1056_v4, %v1052_v5 }
  0xf1   :  { %v1096_v7 = vsel %vm224_vm4, %v1057_v6, %v1095_v0  ;;  %v1003_v8 = vpop.permute.xlu1 %1002  ;;  %v1000_v9 = vpop.permute.xlu0 %999  ;;  %vm37_vm4 = vcmp.lt.s32.totalorder %v29_v25, 16 }
  0xf2   :  { %v1065_v14 = vrot.slane %v1003_v8, %v1750_v16  ;;  %v1061_v17 = vrot.slane %v1000_v9, %v1754_v20  ;;  %vm1928_vm8 = vmand %vm33_vm2, %vm37_vm4  ;;  %vm32_vm2 = vcmp.ge.s32.totalorder %v28_v15, 0  ;;  %vm36_vm4 = vcmp.lt.s32.totalorder %v28_v15, 16 }
  0xf3   :  { %vm1948_vm7 = vmand %vm32_vm2, %vm36_vm4  ;;  %vm548_vm2 = vcmask 130048  }
  0xf4   :  { %v1066_v18 = vsel %vm155_vm1, %v1065_v14, %v1061_v17  ;;  %vm2061_vm4 = vmpackc.low %vm1903_vm14, %vm1898_vm13 }
  0xf5   :  { %v1097_v21 = vsel %vm226_vm5, %v1066_v18, %v1096_v7  ;;  %v331_v22 = vpop.permute.xlu0 %330  ;;  %vm39_vm5 = vcmp.lt.s32.totalorder %v31_v26, 16  ;;  %v1006_v31 = vpop.permute.xlu1 %1005 }
  0xf6   :  { %1430 = vmatmul.mubr.msk.f32.vlgmr.msra.gmra.mrb[0].mxu1 %vm2036_vm9, %v331_v22  ;;  %v1070_v38 = vrot.slane %v1006_v31, %v1754_v20 }
  0xf7   :  { %1445 = vmatpush1.bf16.msk.msra.mxu1 %vm2035_vm15, %v1508_v54  ;;  %616 = vmatprep.mubr.f32.mxu1 %v1505_v19  ;;  %vm1932_vm15 = vmand %vm35_vm3, %vm39_vm5  ;;  %vm34_vm3 = vcmp.ge.s32.totalorder %v30_v12, 0  ;;  %vm38_vm5 = vcmp.lt.s32.totalorder %v30_v12, 16 }
  0xf8   :  { %1432 = vmatprep.subr.mxu1 %v1505_v19  ;;  %vm2039_vm9 = vmpackc.low %vm1932_vm15, %vm1928_vm8 }
  0xf9   :  { %1447 = vmatprep.subr.msk.bf16.mxu0 %vm2039_vm9, %v1508_v54  ;;  %vm1952_vm6 = vmand %vm34_vm3, %vm38_vm5  ;;  %v1009_v11 = vpop.permute.xlu0 %1008  ;;  %v1012_v33 = vpop.permute.xlu1 %1011  ;;  %vm2059_vm3 = vcmask 1047559  }
  0xfa   :  { %vm1448_vm9 = vmpackc.low %vm1952_vm6, %vm1948_vm7  ;;  %v1074_v35 = vrot.slane %v1009_v11, %v1750_v16  ;;  %v1079_v44 = vrot.slane %v1012_v33, %v1754_v20 }
  0xfb   :  { %1449 = vmatpush1.bf16.msk.msra.mxu0 %vm1448_vm9, %v1508_v54 }
  0xfc   :  { %1451 = vmatprep.subr.msk.bf16.mxu0 %vm1442_vm12, %v1508_v54  ;;  %v1075_v43 = vsel %vm155_vm1, %v1074_v35, %v1070_v38  ;;  %vm2058_vm12 = vcmask 64512  }
  0xfd   :  { %v1015_v32 = vpop.permute.xlu0 %1014  ;;  %v1018_v36 = vpop.permute.xlu1 %1017 }
  0xfe   :  { %v1083_v37 = vrot.slane %v1015_v32, %v1750_v16  ;;  %v1088_v40 = vrot.slane %v1018_v36, %v1754_v20 }
 0x100   :  { %v1084_v42 = vsel %vm155_vm1, %v1083_v37, %v1079_v44 }
 0x101   :  { %v1021_v34 = vpop.permute.xlu0 %1020 }
 0x102   :  { %v1092_v39 = vrot.slane %v1021_v34, %v1750_v16  ;;  %v1098_v16 = vsel %vm2056_vm10, %v1075_v43, %v1097_v21 }
 0x103   :  { %v1099_v48 = vsel %vm2057_vm11, %v1084_v42, %v1098_v16 }
 0x104   :  { %v1093_v46 = vsel %vm155_vm1, %v1092_v39, %v1088_v40  ;;  %vm2060_vm1 = vmmov %vm2058_vm12 }
 0x105   :  { %v1100_v20 = vsel %vm2059_vm3, %v1093_v46, %v1099_v48 }
 0x176   :  { %v305_v41 = vpop.f32.mrb[0].mxu0 }
 0x177   :  { %v1426_v45 = vpop.f32.mrb[1].mxu0  ;;  %1364 = vmatmul.mubr.msk.f32.vlgmr.msra.gmra.mrb[2].mxu1 %vm548_vm2, %v305_v41 }
 0x178   :  { %1433 = vmatpush3.msra.mxu1 %v1879_v47  ;;  %1434 = vmatprep.mubr.msk.f32.mxu1 %vm1506_vm0, %v1505_v19  ;;  %v328_v47 = vpop.permute.xlu1 %327 }
 0x179   :  { %1437 = vmatprep.subr.mxu1 %v1505_v19 }
 0x17b   :  { %1435 = vmatmul.mubr.msk.f32.vlgmr.msra.gmra.mrb[4].mxu1 %vm2058_vm12, %v1723_v61 }
 0x17c   :  { %1438 = vmatpush3.msra.mxu1 %v1100_v20  ;;  %1439 = vmatprep.mubr.msk.f32.mxu1 %vm1506_vm0, %v1505_v19  ;;  %vm2062_vm0 = vmpackc.low %vm1932_vm15, %vm1928_vm8 }
 0x17f   :  { %1440 = vmatmul.mubr.msk.f32.vlgmr.msra.gmra.mrb[6].mxu1 %vm2060_vm1, %v331_v22 }
 0x1c9   :  { %v544_v49 = vpop.f32.mrb[0].mxu1 }
 0x1ca   :  { %v545_v50 = vadd.f32 %v544_v49, %v328_v47  ;;  %v1431_v51 = vpop.f32.mrb[1].mxu1 }
 0x1cc   :  { %1369 = vmatmul.mubr.msk.f32.vlgmr.msra.gmra.mrb[2].mxu0 %vm548_vm2, %v545_v50 }
 0x1cd   :  { %1453 = vmatpush1.bf16.msk.msra.mxu0 %vm2061_vm4, %v1508_v54  ;;  %1239 = vmatprep.mubr.f32.mxu0 %v1505_v19 }
 0x1ce   :  { %1455 = vmatprep.subr.msk.bf16.mxu0 %vm2062_vm0, %v1508_v54 }
 0x24a   :  { %v618_v61 = vpop.f32.mrb[2].mxu1 }
 0x24b   :  { %v620_v52 = vpop.f32.mrb[3].mxu1 }
 0x24e   :  { %v937_v53 = vpop.f32.mrb[4].mxu1 }
 0x24f   :  { %v1436_v55 = vpop.f32.mrb[5].mxu1  ;;  %1408 = vmatmul.mubr.msk.f32.vlgmr.msra.gmra.mrb[4].mxu0 %vm548_vm2, %v937_v53 }
 0x250   :  { %1457 = vmatpush1.bf16.msk.msra.mxu0 %vm1448_vm9, %v1508_v54  ;;  %1313 = vmatprep.mubr.f32.mxu0 %v1505_v19 }
 0x252   :  { %v1168_v56 = vpop.f32.mrb[6].mxu1 }
 0x253   :  { %v1441_v57 = vpop.f32.mrb[7].mxu1  ;;  %v1169_v58 = vadd.f32 %v1168_v56, %v328_v47 }
 0x257   :  { %1413 = vmatmul.mubr.msk.f32.vlgmr.msra.gmra.mrb[4].mxu0 %vm548_vm2, %v1169_v58 }
 0x29f   :  { %v692_v59 = vpop.f32.mrb[2].mxu0 }
 0x2a0   :  { %v693_v60 = vadd.f32 %v692_v59, %v618_v61  ;;  %v694_v62 = vpop.f32.mrb[3].mxu0 }
 0x2a1   :  { %v695_v63 = vadd.f32 %v694_v62, %v620_v52 }
 0x2a2   :  { %v697_v0 = vmul.f32 0.5, %v693_v60 }
 0x2a3   :  { %v698_v1 = vmul.f32 0.5, %v695_v63 }
 0x2a4   :  { %1472 = vtanh.f32 %v697_v0 }
 0x2a5   :  { %1474 = vtanh.f32 %v698_v1 }
 0x2ae   :  { %v1473_v2 = vpop.eup %1472 }
 0x2af   :  { %v1475_v3 = vpop.eup %1474  ;;  %v701_v4 = vmul.f32 0.5, %v1473_v2 }
 0x2b0   :  { %v702_v5 = vmul.f32 0.5, %v1475_v3 }
 0x2b1   :  { %v703_v54 = vadd.f32 0.5, %v701_v4 }
 0x2b2   :  { %v704_v6 = vadd.f32 0.5, %v702_v5 }
 0x2b4   :  { %v707_v19 = vcombine.low %v703_v54, %v704_v6 }
 0x2b6   :  { %709 = vst [vmem:[#allocation2] sm:$0xff] %v707_v19 }
 0x32a   :  { %v1315_v7 = vpop.f32.mrb[4].mxu0 }
 0x32b   :  { %v1320_v8 = vmul.f32 0.5, %v1315_v7  ;;  %v1317_v9 = vpop.f32.mrb[5].mxu0 }
 0x32c   :  { %v1321_v10 = vmul.f32 0.5, %v1317_v9 }
 0x32d   :  { %1476 = vtanh.f32 %v1320_v8 }
 0x32e   :  { %1478 = vtanh.f32 %v1321_v10 }
 0x337   :  { %v1477_v13 = vpop.eup %1476 }
 0x338   :  { %v1479_v14 = vpop.eup %1478  ;;  %v1324_v17 = vmul.f32 0.5, %v1477_v13 }
 0x339   :  { %v1325_v18 = vmul.f32 0.5, %v1479_v14 }
 0x33a   :  { %v1326_v21 = vadd.f32 0.5, %v1324_v17 }
 0x33b   :  { %v1327_v22 = vadd.f32 0.5, %v1325_v18 }
 0x33d   :  { %v1330_v23 = vcombine.low %v1326_v21, %v1327_v22 }
 0x33f   :  { %1333 = vst [vmem:[#allocation2 + $0x8] sm:$0xff] %v1330_v23 }
 0x340   :  { %1491 = shalt.err (!%p1488_p4)
}
 0x341   :  { %s1492_s18 = scalar_lea.hbm %s2033_s4, 256 }
 0x342   :  { %p1493_p5 = scmp.ne.s32.totalorder %s2033_s4, %s1492_s18  ;;  %p1496_p6 = scmp.lt.u32.totalorder %s1492_s18, %s2033_s4 }
 0x344   :  { %p1498_p7 = pnand %p1496_p6, %p1493_p5 }
 0x346   :  { %1501 = shalt.err (!%p1498_p7)
}
 0x347   :  { %s1510_s23 = smov 128   ;;  %s1511_s24 = smov 8  }
 0x348   :  { %1345 = dma.vmem_to_hbm [thread:$0]  %s1340_s3, 256, %s2033_s4, [#allocation3], %s1510_s23, %s1510_s23, %s1511_s24  }
 0x349   :  { %1502 = dma.done.wait [#allocation3], 256  }
 0x34a   :  { %1503 = vsyncadd [#allocation3], 4294967040 }
 0x34b   :  { %1349 = vsyncpa [#allocation3], 1 }

</bundles_post_ra>
